<compile_context>
chip_gen: v5e
topology: v5e:2x2
jax: 0.10.0
libtpu: 0.0.40
codegen_flags: <defaults>
</compile_context>

<pallas_src>
import jax
import jax.numpy as jnp
from jax.experimental import pallas as pl
from jax.experimental.pallas import tpu as pltpu

_LANE = 128
_BN_EPS = 1e-5


def _round_up(n, m):
    return ((n + m - 1) // m) * m


def _mlp_bn_kernel(x_ref, w1_ref, gamma_ref, beta_ref, w2_ref, b2_ref, o_ref):
    inv_b = 1.0 / x_ref.shape[0]  # static batch size

    # linear1: [B, F] @ [F, Lp]   (b1 omitted — cancelled by BN mean subtraction)
    h = jnp.dot(x_ref[...], w1_ref[...], preferred_element_type=jnp.float32)

    # BatchNorm1d (training mode, biased variance) — centered two-pass stats,
    # matching PyTorch's numerics (no E[h^2]-E[h]^2 cancellation).
    mean = jnp.sum(h, axis=0, keepdims=True) * inv_b                 # [1, Lp]
    centered = h - mean                                              # [B, Lp]
    var = jnp.sum(centered * centered, axis=0, keepdims=True) * inv_b
    inv_std = jax.lax.rsqrt(var + _BN_EPS)                           # EUP slot

    # Folded BN affine fused with ReLU: max(centered*scale + beta, 0).
    # (Padded latent columns: gamma_pad = beta_pad = 0 => h_act = 0 there.)
    scale = gamma_ref[...] * inv_std                                 # [1, Lp]
    h_act = jnp.maximum(centered * scale + beta_ref[...], 0.0)

    # linear2: [B, Lp] @ [Lp, C] + [1, C]   (C left unpadded; one masked vst)
    out = jnp.dot(h_act, w2_ref[...], preferred_element_type=jnp.float32)
    o_ref[...] = (out + b2_ref[...]).astype(o_ref.dtype)


@jax.jit
def mlp_bn_forward(x, w1p, gammap, betap, w2p, b2):
    """Hot-loop forward.  Expects ALREADY-PADDED params (see pad_params):
      x: [B, F], w1p: [F, Lp], gammap/betap: [1, Lp], w2p: [Lp, C], b2: [1, C].
    Returns logits [B, C].  linear1's bias is mathematically cancelled by the
    batch-statistics BatchNorm that follows it, so it is not an input here.
    No padding or slicing happens per call.
    """
    B, F = x.shape
    Lp = w1p.shape[1]
    C = w2p.shape[1]

    cost = pl.CostEstimate(
        flops=2 * B * (F * Lp + Lp * C) + 8 * B * Lp,
        transcendentals=Lp,
        bytes_accessed=4 * (B * F + F * Lp + 2 * Lp + Lp * C + C + B * C),
    )

    vmem = pl.BlockSpec(memory_space=pltpu.MemorySpace.VMEM)
    return pl.pallas_call(
        _mlp_bn_kernel,
        out_shape=jax.ShapeDtypeStruct((B, C), jnp.float32),
        in_specs=[vmem] * 6,
        out_specs=vmem,
        cost_estimate=cost,
    )(x, w1p, gammap, betap, w2p, b2)


def pad_params(w1, gamma, beta, w2):
    """One-time (init-time) padding of the latent dim to a lane multiple.

    Padded latent columns produce h = 0, gamma_pad = beta_pad = 0 so the
    activation is exactly 0 there, and the matching w2 rows are zero, so the
    padding is numerically exact.  The label dim C is deliberately left
    unpadded (tiny output — masked store is free; padding would ~16x w2).
    """
    L = w1.shape[1]
    Lp = _round_up(L, _LANE)
    pad_l = Lp - L
    w1p = jnp.pad(w1, ((0, 0), (0, pad_l)))
    gammap = jnp.pad(gamma, ((0, 0), (0, pad_l)))
    betap = jnp.pad(beta, ((0, 0), (0, pad_l)))
    w2p = jnp.pad(w2, ((0, pad_l), (0, 0)))
    return w1p, gammap, betap, w2p


def init_params(key, n_feature, n_label, latent_dim):
    """Deterministic parameter init (PyTorch Linear-style uniform bounds)."""
    k1, k2, k3, k4 = jax.random.split(key, 4)
    bound1 = 1.0 / (n_feature ** 0.5)
    w1 = jax.random.uniform(k1, (n_feature, latent_dim), jnp.float32,
                            -bound1, bound1)
    b1 = jax.random.uniform(k2, (1, latent_dim), jnp.float32, -bound1, bound1)
    bound2 = 1.0 / (latent_dim ** 0.5)
    w2 = jax.random.uniform(k3, (latent_dim, n_label), jnp.float32,
                            -bound2, bound2)
    b2 = jax.random.uniform(k4, (1, n_label), jnp.float32, -bound2, bound2)
    # BatchNorm1d affine params: gamma=1, beta=0 (PyTorch defaults)
    gamma = jnp.ones((1, latent_dim), jnp.float32)
    beta = jnp.zeros((1, latent_dim), jnp.float32)
    return w1, b1, gamma, beta, w2, b2


if __name__ == "__main__":
    batch = 8
    n_feature = 32
    latent_dim = 100
    n_label = 10

    key = jax.random.PRNGKey(0)
    kx, kp = jax.random.split(key)
    x = jax.random.normal(kx, (batch, n_feature), jnp.float32)
    w1, b1, gamma, beta, w2, b2 = init_params(kp, n_feature, n_label,
                                              latent_dim)

    # One-time padding outside the hot path (this is the whole point of the
    # perf change: the jitted forward below receives pre-padded params).
    w1p, gammap, betap, w2p = pad_params(w1, gamma, beta, w2)
    w1p, gammap, betap, w2p, b2 = jax.block_until_ready(
        (w1p, gammap, betap, w2p, b2))

    logits = mlp_bn_forward(x, w1p, gammap, betap, w2p, b2)
    jax.block_until_ready(logits)
    assert logits.shape == (batch, n_label)

    # Pure-JAX reference with the *full* PyTorch semantics (including b1) —
    # b1 is cancelled by the batch-mean subtraction, so the kernel matches.
    h = x @ w1 + b1
    mean = jnp.mean(h, axis=0, keepdims=True)
    var = jnp.mean((h - mean) ** 2, axis=0, keepdims=True)
    h = (h - mean) / jnp.sqrt(var + _BN_EPS) * gamma + beta
    ref = jnp.maximum(h, 0.0) @ w2 + b2
    assert jnp.allclose(logits, ref, atol=1e-4, rtol=1e-4)

    print("KERNEL_OK")
</pallas_src>

<mosaic_0001>
module attributes {stable_mosaic.version = 11 : i64} {
  func.func @_mlp_bn_kernel(%arg0: memref<8x32xf32, #tpu.memory_space<vmem>>, %arg1: memref<32x128xf32, #tpu.memory_space<vmem>>, %arg2: memref<1x128xf32, #tpu.memory_space<vmem>>, %arg3: memref<1x128xf32, #tpu.memory_space<vmem>>, %arg4: memref<128x10xf32, #tpu.memory_space<vmem>>, %arg5: memref<1x10xf32, #tpu.memory_space<vmem>>, %arg6: memref<8x10xf32, #tpu.memory_space<vmem>>) attributes {dimension_semantics = [], scalar_prefetch = 0 : i64, scratch_operands = 0 : i64, tpu.core_type = #tpu.core_type<tc>} {
    %c0 = arith.constant 0 : index
    %c0_0 = arith.constant 0 : index
    %0 = vector.load %arg0[%c0, %c0_0] : memref<8x32xf32, #tpu.memory_space<vmem>>, vector<8x32xf32>
    %c0_1 = arith.constant 0 : index
    %c0_2 = arith.constant 0 : index
    %1 = vector.load %arg1[%c0_1, %c0_2] : memref<32x128xf32, #tpu.memory_space<vmem>>, vector<32x128xf32>
    %cst = arith.constant dense<0.000000e+00> : vector<8x128xf32>
    %2 = tpu.matmul %0, %1, %cst {dimension_numbers = #tpu.dot_dimension_numbers<[1], [0], [0], [1], [0, 0, 1, 1], [], []>} : vector<8x32xf32>, vector<32x128xf32>, vector<8x128xf32> -> vector<8x128xf32>
    %cst_3 = arith.constant dense<0.000000e+00> : vector<128xf32>
    %3 = vector.multi_reduction <add>, %2, %cst_3 [0] : vector<8x128xf32> to vector<128xf32>
    %4 = vector.shape_cast %3 : vector<128xf32> to vector<1x128xf32>
    %cst_4 = arith.constant 1.250000e-01 : f32
    %5 = vector.broadcast %cst_4 : f32 to vector<1x128xf32>
    %6 = arith.mulf %4, %5 : vector<1x128xf32>
    %7 = vector.broadcast %6 : vector<1x128xf32> to vector<8x128xf32>
    %8 = arith.subf %2, %7 : vector<8x128xf32>
    %9 = arith.mulf %8, %8 : vector<8x128xf32>
    %cst_5 = arith.constant dense<0.000000e+00> : vector<128xf32>
    %10 = vector.multi_reduction <add>, %9, %cst_5 [0] : vector<8x128xf32> to vector<128xf32>
    %11 = vector.shape_cast %10 : vector<128xf32> to vector<1x128xf32>
    %cst_6 = arith.constant 1.250000e-01 : f32
    %12 = vector.broadcast %cst_6 : f32 to vector<1x128xf32>
    %13 = arith.mulf %11, %12 : vector<1x128xf32>
    %cst_7 = arith.constant 9.99999974E-6 : f32
    %14 = vector.broadcast %cst_7 : f32 to vector<1x128xf32>
    %15 = arith.addf %13, %14 : vector<1x128xf32>
    %16 = math.rsqrt %15 : vector<1x128xf32>
    %c0_8 = arith.constant 0 : index
    %c0_9 = arith.constant 0 : index
    %17 = vector.load %arg2[%c0_8, %c0_9] : memref<1x128xf32, #tpu.memory_space<vmem>>, vector<1x128xf32>
    %18 = arith.mulf %17, %16 : vector<1x128xf32>
    %19 = vector.broadcast %18 : vector<1x128xf32> to vector<8x128xf32>
    %20 = arith.mulf %8, %19 : vector<8x128xf32>
    %c0_10 = arith.constant 0 : index
    %c0_11 = arith.constant 0 : index
    %21 = vector.load %arg3[%c0_10, %c0_11] : memref<1x128xf32, #tpu.memory_space<vmem>>, vector<1x128xf32>
    %22 = vector.broadcast %21 : vector<1x128xf32> to vector<8x128xf32>
    %23 = arith.addf %20, %22 : vector<8x128xf32>
    %cst_12 = arith.constant 0.000000e+00 : f32
    %24 = vector.broadcast %cst_12 : f32 to vector<8x128xf32>
    %25 = arith.maximumf %23, %24 : vector<8x128xf32>
    %c0_13 = arith.constant 0 : index
    %c0_14 = arith.constant 0 : index
    %26 = vector.load %arg4[%c0_13, %c0_14] : memref<128x10xf32, #tpu.memory_space<vmem>>, vector<128x10xf32>
    %cst_15 = arith.constant dense<0.000000e+00> : vector<8x10xf32>
    %27 = tpu.matmul %25, %26, %cst_15 {dimension_numbers = #tpu.dot_dimension_numbers<[1], [0], [0], [1], [0, 0, 1, 1], [], []>} : vector<8x128xf32>, vector<128x10xf32>, vector<8x10xf32> -> vector<8x10xf32>
    %c0_16 = arith.constant 0 : index
    %c0_17 = arith.constant 0 : index
    %28 = vector.load %arg5[%c0_16, %c0_17] : memref<1x10xf32, #tpu.memory_space<vmem>>, vector<1x10xf32>
    %29 = vector.broadcast %28 : vector<1x10xf32> to vector<8x10xf32>
    %30 = arith.addf %27, %29 : vector<8x10xf32>
    %c0_18 = arith.constant 0 : index
    %c0_19 = arith.constant 0 : index
    %31 = vector.load %arg6[%c0_18, %c0_19] : memref<8x10xf32, #tpu.memory_space<vmem>>, vector<8x10xf32>
    tpu.vector_store %arg6[%c0_18, %c0_19], %30 {strides = array<i32>} : memref<8x10xf32, #tpu.memory_space<vmem>>, vector<8x10xf32>,
    return
  }
}

</mosaic_0001>

<bundles_post_ra>
// kernel: mlp_bn_forward.1
= control target key start
LH: loop header
LB: loop body
LE: loop exit
PB: predicated region body
PF: predicated region fallthrough
CT: control target
= control target key end

     0   :  { %s293_s0 = inlined_call_operand.vmem [shape: f32[8,32], index: 0, kind: input, shape index: {}]   ;;  %s294_s1 = inlined_call_operand.vmem [shape: f32[32,128], index: 1, kind: input, shape index: {}]   ;;  %s295_s2 = inlined_call_operand.vmem [shape: f32[1,128], index: 2, kind: input, shape index: {}]   ;;  %s296_s3 = inlined_call_operand.vmem [shape: f32[1,128], index: 3, kind: input, shape index: {}]   ;;  %s297_s4 = inlined_call_operand.vmem [shape: f32[128,10], index: 4, kind: input, shape index: {}]   ;;  %s298_s5 = inlined_call_operand.vmem [shape: f32[1,10], index: 5, kind: input, shape index: {}]   ;;  %s299_s6 = inlined_call_operand.hbm [shape: f32[8,10], index: 6, kind: output, shape index: {}]  }
   0x1   :  { %v28_v0 = vld [vmem:[%s294_s1 + $0x18] sm:$0xff]  ;;  %v27_v1 = vld [vmem:[%s294_s1 + $0x10] sm:$0xff]  ;;  %v26_v2 = vld [vmem:[%s294_s1 + $0x8] sm:$0xff] }
   0x2   :  { %45 = vmatpush.msra.mxu0 %v28_v0 }
   0x3   :  { %11 = vsyncpa [#allocation3], 0  ;;  %v25_v3 = vld [vmem:[%s294_s1] sm:$0xff]  ;;  %vm29_vm0 = vcmask 261120   ;;  %v107_v5 = vld [vmem:[%s297_s4 + $0x78] sm:$0xff]  ;;  %s182_s16 = smov [#allocation2]  }
   0x4   :  { %46 = vmatpush.msra.mxu0 %v27_v1  ;;  %v24_v4 = vld [vmem:[%s293_s0] sm:$0xff]  ;;  %112 = vmatpush.msra.mxu1 %v107_v5  ;;  %v106_v8 = vld [vmem:[%s297_s4 + $0x70] sm:$0xff]  ;;  %v105_v10 = vld [vmem:[%s297_s4 + $0x68] sm:$0xff]  ;;  %s139_s17 = sshll.u32 %s182_s16, 4  ;;  %s141_s19 = sshll.u32 %s299_s6, 4  ;;  %vm132_vm4 = vcmask 80896   ;;  %s140_s17 = int_to_ptr.vmem [resolvable:$true] %s139_s17  ;;  %s142_s19 = int_to_ptr.hbm [resolvable:$true] %s141_s19 }
   0x5   :  { %v104_v12 = vld [vmem:[%s297_s4 + $0x60] sm:$0xff]  ;;  %v103_v14 = vld [vmem:[%s297_s4 + $0x58] sm:$0xff]  ;;  %v102_v16 = vld [vmem:[%s297_s4 + $0x50] sm:$0xff] }
   0x6   :  { %47 = vmatpush.msra.mxu0 %v26_v2  ;;  %113 = vmatpush.msra.mxu1 %v106_v8  ;;  %v101_v18 = vld [vmem:[%s297_s4 + $0x48] sm:$0xff]  ;;  %v100_v20 = vld [vmem:[%s297_s4 + $0x40] sm:$0xff]  ;;  %v99_v22 = vld [vmem:[%s297_s4 + $0x38] sm:$0xff] }
   0x7   :  { %v98_v24 = vld [vmem:[%s297_s4 + $0x30] sm:$0xff]  ;;  %v97_v26 = vld [vmem:[%s297_s4 + $0x28] sm:$0xff]  ;;  %v96_v28 = vld [vmem:[%s297_s4 + $0x20] sm:$0xff] }
   0x8   :  { %48 = vmatpush.msra.mxu0 %v25_v3  ;;  %114 = vmatpush.msra.mxu1 %v105_v10  ;;  %v95_v30 = vld [vmem:[%s297_s4 + $0x18] sm:$0xff]  ;;  %v94_v32 = vld [vmem:[%s297_s4 + $0x10] sm:$0xff]  ;;  %v93_v33 = vld [vmem:[%s297_s4 + $0x8] sm:$0xff] }
   0x9   :  { %150 = vmatmul.msk.f32.vlgmr.msra.gmra.mxu0 %vm29_vm0, %v24_v4  ;;  %v92_v35 = vld [vmem:[%s297_s4] sm:$0xff] }
   0xa   :  { %115 = vmatpush.msra.mxu1 %v104_v12  ;;  %v80_v45 = vld [vmem:[%s295_s2] sm:$0x1] }
   0xb   :  { %v152_v49 = vld [vmem:[%s296_s3] ss:$0 sm:$0xff] }
   0xc   :  { %116 = vmatpush.msra.mxu1 %v103_v14  ;;  %v153_v53 = vld [vmem:[%s298_s5] ss:$0 sm:$0xff] }
   0xe   :  { %117 = vmatpush.msra.mxu1 %v102_v16 }
  0x10   :  { %118 = vmatpush.msra.mxu1 %v101_v18 }
  0x12   :  { %119 = vmatpush.msra.mxu1 %v100_v20 }
  0x14   :  { %120 = vmatpush.msra.mxu1 %v99_v22 }
  0x16   :  { %121 = vmatpush.msra.mxu1 %v98_v24 }
  0x18   :  { %122 = vmatpush.msra.mxu1 %v97_v26 }
  0x1a   :  { %123 = vmatpush.msra.mxu1 %v96_v28 }
  0x1c   :  { %124 = vmatpush.msra.mxu1 %v95_v30 }
  0x1e   :  { %125 = vmatpush.msra.mxu1 %v94_v32 }
  0x20   :  { %126 = vmatpush.msra.mxu1 %v93_v33 }
  0x22   :  { %127 = vmatpush.msra.mxu1 %v92_v35 }
  0x86   :  { %v50_v6 = vpop.f32.mrf.mxu0 }
  0x87   :  { %v53_v7 = vrot.slane %v50_v6, 4 }
  0x89   :  { %v54_v9 = vadd.f32 %v53_v7, %v50_v6 }
  0x8b   :  { %v55_v11 = vrot.slane %v54_v9, 2 }
  0x8d   :  { %v56_v13 = vadd.f32 %v55_v11, %v54_v9 }
  0x8f   :  { %v57_v15 = vrot.slane %v56_v13, 1 }
  0x91   :  { %v58_v17 = vadd.f32 %v57_v15, %v56_v13 }
  0x93   :  { %v59_v19 = vmul.f32 0.125, %v58_v17 }
  0x95   :  { %v60_v21 = vsub.f32 %v50_v6, %v59_v19 }
  0x97   :  { %v61_v23 = vmul.f32 %v60_v21, %v60_v21 }
  0x99   :  { %v62_v25 = vrot.slane %v61_v23, 4 }
  0x9b   :  { %v63_v27 = vadd.f32 %v62_v25, %v61_v23 }
  0x9d   :  { %v64_v29 = vrot.slane %v63_v27, 2 }
  0x9f   :  { %v65_v31 = vadd.f32 %v64_v29, %v63_v27 }
  0xa1   :  { %v66_v34 = vrot.slane %v65_v31, 1 }
  0xa3   :  { %v67_v36 = vadd.f32 %v66_v34, %v65_v31 }
  0xa5   :  { %v68_v37 = vmul.f32 0.125, %v67_v36 }
  0xa7   :  { %v69_v38 = vadd.f32 1e-05, %v68_v37 }
  0xa9   :  { %154 = vrsqrt.f32 %v69_v38  ;;  %vm76_vm2 = vweird.f32 %v69_v38 }
  0xaf   :  { %v155_v39 = vpop.eup %154 }
  0xb0   :  { %v71_v40 = vmul.f32 %v155_v39, %v69_v38  ;;  %vm77_vm1 = vweird.f32 %v155_v39 }
  0xb1   :  { %vm78_vm3 = vmor %vm76_vm2, %vm77_vm1 }
  0xb2   :  { %v72_v41 = vmul.f32 %v155_v39, %v71_v40 }
  0xb4   :  { %v73_v42 = vmul.f32 0.5, %v72_v41 }
  0xb6   :  { %v74_v43 = vsub.f32 1.5, %v73_v42 }
  0xb8   :  { %v75_v44 = vmul.f32 %v155_v39, %v74_v43 }
  0xba   :  { %v79_v46 = vsel %vm78_vm3, %v155_v39, %v75_v44 }
  0xbb   :  { %v81_v47 = vmul.f32 %v80_v45, %v79_v46 }
  0xbd   :  { %v83_v48 = vperm.slane %v81_v47, 0 }
  0xbf   :  { %v85_v50 = vmul.f32 %v83_v48, %v60_v21 }
  0xc1   :  { %v90_v51 = vadd.f32 %v152_v49, %v85_v50 }
  0xc3   :  { %v91_v52 = vmax.f32 %v90_v51, 0.0 }
  0xc5   :  { %128 = vmatmul.f32.vlgmr.msra.gmra.mxu1 %v91_v52 }
 0x142   :  { %v129_v54 = vpop.f32.mrf.mxu1 }
 0x143   :  { %v130_v55 = vadd.f32 %v153_v53, %v129_v54 }
 0x145   :  { %133 = vst.msk [vmem:[#allocation2] sm:$0xff] %vm132_vm4, %v130_v55 }
 0x146   :  { %144 = dma.vmem_to_hbm [thread:$0]  %s140_s17, 128, %s142_s19, [#allocation3]  }
 0x147   :  { %180 = dma.done.wait [#allocation3], 128  }
 0x148   :  { %181 = vsyncadd [#allocation3], 4294967168 }
 0x149   :  { %149 = vsyncpa [#allocation3], 1 }

</bundles_post_ra>
